<compile_context>
chip_gen: v7x
topology: tpu7x:2x2x1
jax: 0.10.0
libtpu: 0.0.40
codegen_flags: <defaults>
</compile_context>

<pallas_src>
import jax
import jax.numpy as jnp
from jax.experimental import pallas as pl
from jax.experimental.pallas import tpu as pltpu


def _moving_average_kernel(pos_ref, buf_in_ref, x_ref, newbuf_ref, mean_ref,
                           sum_ref):
    """One grid step == one forward() step on x_ref (block shape (1, *size))."""
    B = buf_in_ref.shape[0]
    inv_b = 1.0 / B  # compile-time constant multiply (cheaper than a divide)
    t = pl.program_id(0)

    # First step of this call: seed the VMEM-resident output buffer from the
    # input buffer and (re)build the exact running sum.  Both stay resident in
    # VMEM for the whole call -> one HBM round-trip of the buffer per call.
    @pl.when(t == 0)
    def _():
        newbuf_ref[...] = buf_in_ref[...]
        sum_ref[...] = buf_in_ref[...].astype(jnp.float32).sum(axis=0)

    pos = pos_ref[t]                                  # circular write position
    x = x_ref[0].astype(newbuf_ref.dtype)

    evicted = newbuf_ref[pos].astype(jnp.float32)     # read BEFORE overwrite
    newbuf_ref[pos] = x                               # overwrite only one row
    sum_ref[...] = sum_ref[...] + (x.astype(jnp.float32) - evicted)

    # Once per wrap of the head pointer, rebuild the sum exactly from the
    # VMEM-resident buffer to bound FP drift.  B-1 vadds, hidden under DMA.
    @pl.when(pos == B - 1)
    def _():
        sum_ref[...] = newbuf_ref[...].astype(jnp.float32).sum(axis=0)

    mean_ref[0] = (sum_ref[...] * inv_b).astype(mean_ref.dtype)


@jax.jit
def moving_average_steps(head, buffer, xs):
    """Apply T forward() steps in a single pallas_call.

    Args:
      head:   (1,) int32 -- circular write position (index of the oldest row).
      buffer: (B, *size) -- circular-buffer contents.
      xs:     (T, *size) -- T inputs, processed in order.
    Returns:
      (new_head, new_buffer, means), means[t] == forward(xs[t]) output.
    """
    B = buffer.shape[0]
    size = buffer.shape[1:]
    T = xs.shape[0]
    nz = (0,) * len(size)
    itemsize = jnp.dtype(buffer.dtype).itemsize
    elems = 1
    for s in size:
        elems *= int(s)

    # Per-step write positions, precomputed on the host side of the call and
    # scalar-prefetched into SMEM (no in-kernel modulo needed).
    positions = ((head[0] + jnp.arange(T, dtype=jnp.int32)) % B).astype(jnp.int32)

    buf_in_spec = pl.BlockSpec((B,) + size, lambda t, p: (0,) + nz)
    x_spec = pl.BlockSpec((1,) + size, lambda t, p: (t,) + nz)
    buf_out_spec = pl.BlockSpec((B,) + size, lambda t, p: (0,) + nz)
    mean_spec = pl.BlockSpec((1,) + size, lambda t, p: (t,) + nz)

    new_buffer, means = pl.pallas_call(
        _moving_average_kernel,
        out_shape=(
            jax.ShapeDtypeStruct(buffer.shape, buffer.dtype),   # new buffer
            jax.ShapeDtypeStruct((T,) + size, buffer.dtype),    # per-step means
        ),
        grid_spec=pltpu.PrefetchScalarGridSpec(
            num_scalar_prefetch=1,
            grid=(T,),
            in_specs=[buf_in_spec, x_spec],
            out_specs=[buf_out_spec, mean_spec],
            scratch_shapes=[pltpu.VMEM(size, jnp.float32)],
        ),
        compiler_params=pltpu.CompilerParams(
            # State (buffer + running sum) is carried across grid steps.
            dimension_semantics=("arbitrary",),
        ),
        cost_estimate=pl.CostEstimate(
            flops=(3 * T + (T // B + 2) * B) * elems,
            transcendentals=0,
            bytes_accessed=(2 * B + 2 * T) * elems * itemsize,
        ),
    )(positions, buffer, xs)

    new_head = (head + T) % B
    return new_head, new_buffer, means


class MovingAverage:
    """Stateful wrapper mirroring the nn.Module (buffer/head are JAX state)."""

    def __init__(self, size, buffer_size=128, init_value=0.0, dtype=jnp.float32):
        self.size = tuple(size)
        self.buffer_size = int(buffer_size)
        self.buffer = jnp.full((self.buffer_size,) + self.size, init_value,
                               dtype=dtype)
        self.head = jnp.zeros((1,), dtype=jnp.int32)

    def __call__(self, x):
        """Single forward step (matches torch forward)."""
        return self.forward_batch(x[None])[0]

    def forward_batch(self, xs):
        """Process T inputs in one kernel call; returns the T means."""
        self.head, self.buffer, means = moving_average_steps(
            self.head, self.buffer, xs)
        return means

    def logical_buffer(self):
        """Buffer rows in torch order (oldest -> newest)."""
        idx = (self.head[0] + jnp.arange(self.buffer_size)) % self.buffer_size
        return self.buffer[idx]


if __name__ == "__main__":
    key = jax.random.PRNGKey(0)
    buffer_size = 8
    size = (8, 128)  # (sublanes, lanes) -- lane-dense last dim
    T = 20           # > buffer_size so the circular head wraps

    ma = MovingAverage(size, buffer_size=buffer_size, init_value=0.0)

    k1, k2, k3 = jax.random.split(key, 3)
    xs = jax.random.normal(k1, (T,) + size, dtype=jnp.float32)
    x_a = jax.random.normal(k2, size, dtype=jnp.float32)
    x_b = jax.random.normal(k3, size, dtype=jnp.float32)

    # Pure-JAX reference implementing the literal torch semantics
    # (shift-concatenate + mean), computed from the initial buffer.
    def reference(buf0, steps):
        buf = buf0
        means = []
        for x in steps:
            buf = jnp.concatenate([buf[1:], x[None]], axis=0)
            means.append(buf.mean(axis=0))
        return buf, jnp.stack(means)

    ref_buf, ref_means = reference(ma.buffer, list(xs) + [x_a, x_b])

    means = ma.forward_batch(xs)   # T steps in one pallas_call
    out_a = ma(x_a)                # single-step calls (T=1)
    out_b = ma(x_b)
    jax.block_until_ready((means, out_a, out_b))

    got_means = jnp.concatenate([means, out_a[None], out_b[None]], axis=0)
    assert got_means.shape == ref_means.shape
    max_err = float(jnp.max(jnp.abs(got_means - ref_means)))
    assert jnp.allclose(got_means, ref_means, atol=1e-5, rtol=1e-5), max_err

    # The circular buffer, read out in logical (oldest -> newest) order, must
    # match torch's shifted buffer exactly.
    assert jnp.allclose(ma.logical_buffer(), ref_buf, atol=1e-6, rtol=1e-6)

    print("KERNEL_OK")
</pallas_src>

<mosaic_0001>
module attributes {stable_mosaic.version = 11 : i64} {
  func.func @_moving_average_kernel(%arg0: i32, %arg1: memref<20xi32, #tpu.memory_space<smem>>, %arg2: memref<8x8x128xf32, #tpu.memory_space<vmem>>, %arg3: memref<1x8x128xf32, #tpu.memory_space<vmem>>, %arg4: memref<8x8x128xf32, #tpu.memory_space<vmem>>, %arg5: memref<1x8x128xf32, #tpu.memory_space<vmem>>, %arg6: memref<8x128xf32, #tpu.memory_space<vmem>>) attributes {dimension_semantics = [#tpu.dimension_semantics<arbitrary>], iteration_bounds = array<i64: 20>, scalar_prefetch = 1 : i64, scratch_operands = 1 : i64, tpu.core_type = #tpu.core_type<tc>, window_params = [{pipeline_mode = #tpu.pipeline_mode<synchronous>, transform_indices = @transform_0, window_bounds = array<i64: 8, 8, 128>}, {transform_indices = @transform_1, window_bounds = array<i64: 1, 8, 128>}, {pipeline_mode = #tpu.pipeline_mode<synchronous>, transform_indices = @transform_2, window_bounds = array<i64: 8, 8, 128>}, {transform_indices = @transform_3, window_bounds = array<i64: 1, 8, 128>}]} {
    %c0_i32 = arith.constant 0 : i32
    %0 = arith.cmpi eq, %arg0, %c0_i32 : i32
    %1 = arith.extui %0 : i1 to i32
    %c0_i32_0 = arith.constant 0 : i32
    %2 = arith.cmpi ne, %1, %c0_i32_0 : i32
    scf.if %2 {
      %c0_17 = arith.constant 0 : index
      %c0_18 = arith.constant 0 : index
      %c0_19 = arith.constant 0 : index
      %27 = vector.load %arg2[%c0_17, %c0_18, %c0_19] : memref<8x8x128xf32, #tpu.memory_space<vmem>>, vector<8x8x128xf32>
      %c0_20 = arith.constant 0 : index
      %c0_21 = arith.constant 0 : index
      %c0_22 = arith.constant 0 : index
      %28 = vector.load %arg4[%c0_20, %c0_21, %c0_22] : memref<8x8x128xf32, #tpu.memory_space<vmem>>, vector<8x8x128xf32>
      tpu.vector_store %arg4[%c0_20, %c0_21, %c0_22], %27 {strides = array<i32>} : memref<8x8x128xf32, #tpu.memory_space<vmem>>, vector<8x8x128xf32>,
      %c0_23 = arith.constant 0 : index
      %c0_24 = arith.constant 0 : index
      %c0_25 = arith.constant 0 : index
      %29 = vector.load %arg2[%c0_23, %c0_24, %c0_25] : memref<8x8x128xf32, #tpu.memory_space<vmem>>, vector<8x8x128xf32>
      %cst_26 = arith.constant dense<0.000000e+00> : vector<8x128xf32>
      %30 = vector.multi_reduction <add>, %29, %cst_26 [0] : vector<8x8x128xf32> to vector<8x128xf32>
      %c0_27 = arith.constant 0 : index
      %c0_28 = arith.constant 0 : index
      %31 = vector.load %arg6[%c0_27, %c0_28] : memref<8x128xf32, #tpu.memory_space<vmem>>, vector<8x128xf32>
      tpu.vector_store %arg6[%c0_27, %c0_28], %30 {strides = array<i32>} : memref<8x128xf32, #tpu.memory_space<vmem>>, vector<8x128xf32>,
    } else {
    }
    %3 = arith.index_cast %arg0 : i32 to index
    %4 = memref.load %arg1[%3] : memref<20xi32, #tpu.memory_space<smem>>
    %c0 = arith.constant 0 : index
    %c0_1 = arith.constant 0 : index
    %c0_2 = arith.constant 0 : index
    %5 = vector.load %arg3[%c0, %c0_1, %c0_2] : memref<1x8x128xf32, #tpu.memory_space<vmem>>, vector<1x8x128xf32>
    %6 = vector.shape_cast %5 : vector<1x8x128xf32> to vector<8x128xf32>
    %7 = arith.index_cast %4 : i32 to index
    %c0_3 = arith.constant 0 : index
    %c0_4 = arith.constant 0 : index
    %8 = vector.load %arg4[%7, %c0_3, %c0_4] : memref<8x8x128xf32, #tpu.memory_space<vmem>>, vector<1x8x128xf32>
    %9 = vector.shape_cast %8 : vector<1x8x128xf32> to vector<8x128xf32>
    %10 = arith.index_cast %4 : i32 to index
    %c0_5 = arith.constant 0 : index
    %c0_6 = arith.constant 0 : index
    %11 = vector.load %arg4[%10, %c0_5, %c0_6] : memref<8x8x128xf32, #tpu.memory_space<vmem>>, vector<1x8x128xf32>
    %12 = vector.shape_cast %11 : vector<1x8x128xf32> to vector<8x128xf32>
    %13 = vector.shape_cast %6 : vector<8x128xf32> to vector<1x8x128xf32>
    tpu.vector_store %arg4[%10, %c0_5, %c0_6], %13 {strides = array<i32>} : memref<8x8x128xf32, #tpu.memory_space<vmem>>, vector<1x8x128xf32>,
    %c0_7 = arith.constant 0 : index
    %c0_8 = arith.constant 0 : index
    %14 = vector.load %arg6[%c0_7, %c0_8] : memref<8x128xf32, #tpu.memory_space<vmem>>, vector<8x128xf32>
    %15 = arith.subf %6, %9 : vector<8x128xf32>
    %16 = arith.addf %14, %15 : vector<8x128xf32>
    %c0_9 = arith.constant 0 : index
    %c0_10 = arith.constant 0 : index
    %17 = vector.load %arg6[%c0_9, %c0_10] : memref<8x128xf32, #tpu.memory_space<vmem>>, vector<8x128xf32>
    tpu.vector_store %arg6[%c0_9, %c0_10], %16 {strides = array<i32>} : memref<8x128xf32, #tpu.memory_space<vmem>>, vector<8x128xf32>,
    %c7_i32 = arith.constant 7 : i32
    %18 = arith.cmpi eq, %4, %c7_i32 : i32
    %19 = arith.extui %18 : i1 to i32
    %c0_i32_11 = arith.constant 0 : i32
    %20 = arith.cmpi ne, %19, %c0_i32_11 : i32
    scf.if %20 {
      %c0_17 = arith.constant 0 : index
      %c0_18 = arith.constant 0 : index
      %c0_19 = arith.constant 0 : index
      %27 = vector.load %arg4[%c0_17, %c0_18, %c0_19] : memref<8x8x128xf32, #tpu.memory_space<vmem>>, vector<8x8x128xf32>
      %cst_20 = arith.constant dense<0.000000e+00> : vector<8x128xf32>
      %28 = vector.multi_reduction <add>, %27, %cst_20 [0] : vector<8x8x128xf32> to vector<8x128xf32>
      %c0_21 = arith.constant 0 : index
      %c0_22 = arith.constant 0 : index
      %29 = vector.load %arg6[%c0_21, %c0_22] : memref<8x128xf32, #tpu.memory_space<vmem>>, vector<8x128xf32>
      tpu.vector_store %arg6[%c0_21, %c0_22], %28 {strides = array<i32>} : memref<8x128xf32, #tpu.memory_space<vmem>>, vector<8x128xf32>,
    } else {
    }
    %c0_12 = arith.constant 0 : index
    %c0_13 = arith.constant 0 : index
    %21 = vector.load %arg6[%c0_12, %c0_13] : memref<8x128xf32, #tpu.memory_space<vmem>>, vector<8x128xf32>
    %cst = arith.constant 1.250000e-01 : f32
    %22 = vector.broadcast %cst : f32 to vector<8x128xf32>
    %23 = arith.mulf %21, %22 : vector<8x128xf32>
    %c0_14 = arith.constant 0 : index
    %c0_15 = arith.constant 0 : index
    %c0_16 = arith.constant 0 : index
    %24 = vector.load %arg5[%c0_14, %c0_15, %c0_16] : memref<1x8x128xf32, #tpu.memory_space<vmem>>, vector<1x8x128xf32>
    %25 = vector.shape_cast %24 : vector<1x8x128xf32> to vector<8x128xf32>
    %26 = vector.shape_cast %23 : vector<8x128xf32> to vector<1x8x128xf32>
    tpu.vector_store %arg5[%c0_14, %c0_15, %c0_16], %26 {strides = array<i32>} : memref<1x8x128xf32, #tpu.memory_space<vmem>>, vector<1x8x128xf32>,
    return
  }
  func.func @transform_0(%arg0: i32, %arg1: memref<20xi32, #tpu.memory_space<smem>>) -> (i32, i32, i32) {
    %c0_i32 = arith.constant 0 : i32
    %c0_i32_0 = arith.constant 0 : i32
    %c0_i32_1 = arith.constant 0 : i32
    %c0_i32_2 = arith.constant 0 : i32
    return %c0_i32, %c0_i32_0, %c0_i32_1 : i32, i32, i32
  }
  func.func @transform_1(%arg0: i32, %arg1: memref<20xi32, #tpu.memory_space<smem>>) -> (i32, i32, i32) {
    %c0_i32 = arith.constant 0 : i32
    %c0_i32_0 = arith.constant 0 : i32
    %c0_i32_1 = arith.constant 0 : i32
    return %arg0, %c0_i32, %c0_i32_0 : i32, i32, i32
  }
  func.func @transform_2(%arg0: i32, %arg1: memref<20xi32, #tpu.memory_space<smem>>) -> (i32, i32, i32) {
    %c0_i32 = arith.constant 0 : i32
    %c0_i32_0 = arith.constant 0 : i32
    %c0_i32_1 = arith.constant 0 : i32
    %c0_i32_2 = arith.constant 0 : i32
    return %c0_i32, %c0_i32_0, %c0_i32_1 : i32, i32, i32
  }
  func.func @transform_3(%arg0: i32, %arg1: memref<20xi32, #tpu.memory_space<smem>>) -> (i32, i32, i32) {
    %c0_i32 = arith.constant 0 : i32
    %c0_i32_0 = arith.constant 0 : i32
    %c0_i32_1 = arith.constant 0 : i32
    return %arg0, %c0_i32, %c0_i32_0 : i32, i32, i32
  }
}

</mosaic_0001>

<bundles_post_ra>
// kernel: moving_average_steps.1
= control target key start
LH: loop header
LB: loop body
LE: loop exit
PB: predicated region body
PF: predicated region fallthrough
CT: control target
= control target key end

     0   :  { %s913_s0 = inlined_call_operand.vmem [shape: s32[20], index: 0, kind: input, shape index: {}]   ;;  %s914_s1 = inlined_call_operand.hbm [shape: f32[8,8,128], index: 1, kind: input, shape index: {}]   ;;  %s915_s2 = inlined_call_operand.hbm [shape: f32[20,8,128], index: 2, kind: input, shape index: {}]   ;;  %s916_s3 = inlined_call_operand.hbm [shape: f32[8,8,128], index: 3, kind: output, shape index: {0}]   ;;  %s917_s4 = inlined_call_operand.hbm [shape: f32[20,8,128], index: 4, kind: output, shape index: {1}]  }
   0x1   :  { %s10_s17 = sshll.u32 %s913_s0, 4  ;;  %s11_s17 = int_to_ptr.vmem [resolvable:$true] %s10_s17 }
   0x2   :  { %s488_s18 = scalar_lea.vmem %s11_s17, 16  ;;  %p493_p1 = scmp.lt.s32.totalorder %s11_s17, %s11_s17 }
   0x3   :  { %p489_p0 = scmp.ne.s32.totalorder %s11_s17, %s488_s18  ;;  %p494_p2 = scmp.lt.s32.totalorder %s488_s18, %s488_s18 }
   0x5   :  { %p495_p3 = por %p494_p2, %p493_p1 }
   0x7   :  { %p496_p4 = pnand %p495_p3, %p489_p0 }
   0x9   :  { %499 = shalt.err (!%p496_p4)  }
   0xa   :  { %s662_s19 = smov [#allocation4]  }
   0xb   :  { %13 = dma.vmem_to_smem %s11_s17, 16, %s662_s19, [#allocation3] }
   0xc   :  { %628 = dma.done.wait [#allocation3], 16 }
   0xd   :  { %629 = vsyncadd [#allocation3], 4294967280 }
   0xe   :  { %15 = sfence }
   0xf   :  { %16 = vsyncpa [#allocation6], 0 }
  0x10   :  { %17 = vsyncpa [#allocation9], 0 }
  0x11   :  { %19 = vsyncpa [#allocation9 + $0x1], 0 }
  0x12   :  { %20 = vsyncpa [#allocation7], 0 }
  0x13   :  { %21 = vsyncpa [#allocation12], 0 }
  0x14   :  { %23 = vsyncpa [#allocation12 + $0x1], 0  ;;  %s699_s0 = smov 0   ;;  %s701_s20 = smov 0  }
  0x15   :  { %s703_s21 = smov 0   ;;  %s705_s22 = smov 0  }
  0x16 LB: > { %s720_s23 = sadd.s32 4294967295, %s660_s22   ;;  %s400_s24 = sadd.s32 4294967294, %s660_s22   ;;  %s660_s22 = sphi %s705_s22, %s941_s22   ;;  %s656_s21 = sphi %s703_s21, %s940_s21   ;;  %s652_s20 = sphi %s701_s20, %s939_s20   ;;  %s648_s0 = sphi %s699_s0, %s938_s0  }
  0x17   : > { %p70_p5 = scmp.ne.s32.totalorder %s652_s20, %s648_s0  ;;  %p918_p6 = scmp.eq.s32.totalorder %s720_s23, 0 }
  0x18   : > { %p121_p8 = scmp.eq.s32.totalorder %s400_s24, 19  ;;  %p401_p10 = scmp.ge.s32.totalorder %s660_s22, 1 }
  0x19   : > { %p729_p9 = por %p918_p6, %p70_p5  ;;  %p128_p12 = scmp.lt.s32.totalorder %s660_s22, 21 }
  0x1a   : > { %p734_p11 = por %p121_p8, %p70_p5  ;;  %s663_s28 = smov [#allocation5]  }
  0x1b   : > { %s921_s25 = scalar_select %p729_p9, 1, 0 }
  0x1c   : > { %s922_s26 = scalar_select %p734_p11, 1, 0 }
  0x1d   : > { %p740_p0 = pnand %p401_p10, %p128_p12  ;;  %s140_s29 = sshll.u32 %s663_s28, 4  ;;  %s141_s29 = int_to_ptr.vmem [resolvable:$true] %s140_s29 }
  0x1e   : > { %s753_s5 = sadd.s32 1, %s660_s22   ;;  %s57_s6 = sadd.s32 1, %s656_s21 }
  0x1f   : > { %s923_s27 = scalar_select %p740_p0, 1, 0 }
  0x20   : > { %p431_p1 = pneg %p740_p0  ;;  %s54_s7 = ssub.s32 %s660_s22, %s753_s5 }
  0x21   : > { %s500_s10 = scalar_lea.hbm %s914_s1, 1024 }
  0x22   : > { %p748_p2 = pnand %p431_p1, %p918_p6  ;;  %p501_p3 = scmp.ne.s32.totalorder %s914_s1, %s500_s10 }
  0x23   : > { %p507_p10 = scmp.lt.u32.totalorder %s500_s10, %s914_s1 }
  0x24   : > { %p502_p4 = pneg %p748_p2 }
  0x26   : > { %p503_p5 = pnand %p502_p4, %p501_p3 }
  0x28   : > { %p504_p8 = pneg %p503_p5 }
  0x2a   : > { %p509_p12 = pnand %p507_p10, %p504_p8 }
  0x2c   : > { %512 = shalt.err (!%p509_p12)
}
  0x2d   : > { %s513_s15 = scalar_lea.vmem %s141_s29, 1024  ;;  %p521_p7 = scmp.lt.s32.totalorder %s141_s29, %s141_s29 }
  0x2e   : > { %p514_p1 = scmp.ne.s32.totalorder %s141_s29, %s513_s15  ;;  %p522_p11 = scmp.lt.s32.totalorder %s513_s15, %s513_s15 }
  0x30   : > { %p516_p13 = pnand %p514_p1, %p502_p4  ;;  %p523_p9 = por %p522_p11, %p521_p7 }
  0x32   : > { %p517_p6 = pneg %p516_p13 }
  0x34   : > { %p524_p0 = pnand %p523_p9, %p517_p6 }
  0x36   : > { %527 = shalt.err (!%p524_p0)
}
  0x37   : > { %s664_s16 = smov 128   ;;  %s665_s17 = smov 8  }
  0x38   : > { %434 = dma.hbm_to_vmem [thread:$0]  (!%p748_p2), %s914_s1, 1024, %s141_s29, [#allocation6], %s664_s16, %s664_s16, %s665_s17  }
  0x39   : > { %p55_p13 = scmp.eq.s32.totalorder %s54_s7, 0  ;;  %p64_p7 = scmp.ne.s32.totalorder %s656_s21, %s652_s20 }
  0x3a   : > { %p65_p6 = scmp.eq.s32.totalorder %s660_s22, 0  ;;  %p444_p9 = scmp.lt.s32.totalorder %s660_s22, 20 }
  0x3b   : > { %s779_s24 = scalar_select %p55_p13, %s656_s21, %s57_s6  }
  0x3c   : > { %p66_p11 = por %p65_p6, %p64_p7  ;;  %p925_p0 = scmp.eq.s32.totalorder %s720_s23, 19 }
  0x3d   : > { %s154_s8 = sand.u32 1, %s656_s21   ;;  %s405_s9 = sshll.u32 %s660_s22, 7 }
  0x3e   : > { %p783_p3 = por %p925_p0, %p64_p7  ;;  %s404_s10 = sshll.u32 %s154_s8, 3 }
  0x3f   : > { %s792_s12 = scalar_lea.hbm %s915_s2, %s405_s9  ;;  %s158_s29 = scalar_lea.vmem [#allocation8], %s404_s10 }
  0x40   : > { %s165_s6 = sshll.u32 %s158_s29, 4  ;;  %p794_p2 = pnand %p444_p9, %p66_p11  ;;  %s798_s6 = int_to_ptr.vmem [resolvable:$true] %s165_s6 }
  0x41   : > { %s155_s13 = scalar_lea.sflag [#allocation9], %s154_s8  ;;  %s528_s14 = scalar_lea.hbm %s792_s12, 128 }
  0x42   : > { %p529_p4 = scmp.ne.s32.totalorder %s792_s12, %s528_s14  ;;  %p530_p5 = pneg %p794_p2 }
  0x43   : > { %s533_s17 = scalar_lea.hbm %s915_s2, 2560  ;;  %p534_p12 = scmp.lt.u32.totalorder %s792_s12, %s915_s2 }
  0x44   : > { %p531_p8 = pnand %p530_p5, %p529_p4  ;;  %p535_p1 = scmp.lt.u32.totalorder %s533_s17, %s528_s14 }
  0x45   : > { %p537_p7 = scmp.lt.u32.totalorder %s528_s14, %s792_s12 }
  0x46   : > { %p532_p10 = pneg %p531_p8  ;;  %p536_p13 = por %p535_p1, %p534_p12 }
  0x48   : > { %p538_p6 = por %p537_p7, %p536_p13 }
  0x4a   : > { %p539_p9 = pnand %p538_p6, %p532_p10 }
  0x4c   : > { %542 = shalt.err (!%p539_p9)
}
  0x4d   : > { %s543_s8 = scalar_lea.vmem %s798_s6, 128  ;;  %s666_s9 = smov [#allocation8]  }
  0x4e   : > { %p544_p11 = scmp.ne.s32.totalorder %s798_s6, %s543_s8  ;;  %s548_s10 = sshll.u32 %s666_s9, 4  ;;  %s549_s10 = int_to_ptr.vmem [resolvable:$false] %s548_s10 }
  0x4f   : > { %s550_s30 = scalar_lea.vmem %s549_s10, 256  ;;  %p551_p8 = scmp.lt.s32.totalorder %s798_s6, %s549_s10 }
  0x50   : > { %p546_p0 = pnand %p544_p11, %p530_p5  ;;  %p552_p12 = scmp.lt.s32.totalorder %s550_s30, %s543_s8 }
  0x52   : > { %p547_p4 = pneg %p546_p0  ;;  %p553_p1 = por %p552_p12, %p551_p8 }
  0x54   : > { %p554_p13 = pnand %p553_p1, %p547_p4 }
  0x56   : > { %557 = shalt.err (!%p554_p13)
}
  0x57   : > { %438 = dma.hbm_to_vmem [thread:$0]  (!%p794_p2), %s792_s12, 128, %s798_s6, %s155_s13  }
  0x58   : > { %p928_p10 = scmp.ne.s32.totalorder %s923_s27, 0 }
  0x59   : > { %p929_p5 = scmp.eq.s32.totalorder (!%p928_p10), %s720_s23, 0 }
  0x5a   : > { %174 = sbr.rel (%p928_p10) target bundleno = 204 (0xcc), region = 28 }
  0x61   : > { %631 = dma.done.wait (%p929_p5), [#allocation6], 1024   ;;  %p930_p7 = pmov %p929_p5 }
  0x62   : > { %s832_s11 = sand.u32 1, %s652_s20   ;;  %p931_p2 = scmp.ne.s32.totalorder %s921_s25, 0 }
  0x63   : > { %633 = vsyncadd (%p930_p7), [#allocation6], 4294966272  ;;  %s408_s29 = sshll.u32 %s832_s11, 3  ;;  %s181_s7 = scalar_lea.sflag [#allocation9], %s832_s11 }
  0x64   : > { %s836_s14 = scalar_lea.vmem [#allocation8], %s408_s29 }
  0x65   : > { %635 = dma.done.wait (%p931_p2), %s181_s7, 128  }
  0x66   : > { %637 = vsyncadd (%p931_p2), %s181_s7, 4294967168  ;;  %s842_s27 = scalar_lea.vmem [#allocation11], %s408_s29  ;;  %p932_p6 = scmp.ne.s32.totalorder %s720_s23, 0 }
  0x67   : > { %v211_v0 = vld [vmem:[#allocation5] sm:$0xff] (!%p932_p6)  ;;  %v212_v1 = vld [vmem:[#allocation5 + $0x8] sm:$0xff] (!%p932_p6)  ;;  %v213_v2 = vld [vmem:[#allocation5 + $0x10] sm:$0xff] (!%p932_p6) }
  0x68   : > { %210 = sbr.rel (%p932_p6) target bundleno = 119 (0x77), region = 40  ;;  %219 = vst [vmem:[#allocation10] sm:$0xff] (!%p932_p6), %v211_v0  ;;  %220 = vst [vmem:[#allocation10 + $0x8] sm:$0xff] (!%p932_p6), %v212_v1  ;;  %v214_v3 = vld [vmem:[#allocation5 + $0x18] sm:$0xff] (!%p932_p6)  ;;  %v215_v4 = vld [vmem:[#allocation5 + $0x20] sm:$0xff] (!%p932_p6)  ;;  %v235_v6 = vadd.f32 (!%p932_p6), %v212_v1, %v211_v0 }
  0x69   : > { %221 = vst [vmem:[#allocation10 + $0x10] sm:$0xff] (!%p932_p6), %v213_v2  ;;  %v216_v5 = vld [vmem:[#allocation5 + $0x28] sm:$0xff] (!%p932_p6)  ;;  %222 = vst [vmem:[#allocation10 + $0x18] sm:$0xff] (!%p932_p6), %v214_v3  ;;  %v217_v7 = vld [vmem:[#allocation5 + $0x30] sm:$0xff] (!%p932_p6) }
  0x6a   : > { %223 = vst [vmem:[#allocation10 + $0x20] sm:$0xff] (!%p932_p6), %v215_v4  ;;  %224 = vst [vmem:[#allocation10 + $0x28] sm:$0xff] (!%p932_p6), %v216_v5  ;;  %v218_v8 = vld [vmem:[#allocation5 + $0x38] sm:$0xff] (!%p932_p6)  ;;  %v236_v9 = vadd.f32 (!%p932_p6), %v235_v6, %v213_v2 }
  0x6b   : > { %225 = vst [vmem:[#allocation10 + $0x30] sm:$0xff] (!%p932_p6), %v217_v7  ;;  %226 = vst [vmem:[#allocation10 + $0x38] sm:$0xff] (!%p932_p6), %v218_v8 }
  0x6c   : > { %v237_v10 = vadd.f32 (!%p932_p6), %v236_v9, %v214_v3 }
  0x6e   : > { %v238_v11 = vadd.f32 (!%p932_p6), %v237_v10, %v215_v4 }
  0x70   : > { %v239_v12 = vadd.f32 %v238_v11, %v216_v5 }
  0x72   : > { %v240_v13 = vadd.f32 %v239_v12, %v217_v7 }
  0x74   : > { %v241_v14 = vadd.f32 %v240_v13, %v218_v8 }
  0x76   : > { %242 = vst [vmem:[#allocation2] sm:$0xff] %v241_v14 }
  0x77 PF: > { %s243_s25 = sld [smem:[#allocation4 + %s720_s23]]  ;;  %v244_v15 = vld [vmem:[%s836_s14] sm:$0xff] }
  0x7d   : > { %s411_s12 = sshll.u32 %s243_s25, 3  ;;  %v249_v17 = vld [vmem:[#allocation2] sm:$0xff]  ;;  %p412_p9 = scmp.ne.s32.totalorder %s243_s25, 7 }
  0x7e   : > { %s246_s6 = scalar_lea.vmem [#allocation10], %s411_s12 }
  0x7f   : > { %v247_v16 = vld [vmem:[%s246_s6] sm:$0xff]  ;;  %256 = sbr.rel (%p412_p9) target bundleno = 151 (0x97), region = 44 }
  0x80   : > { %248 = vst [vmem:[%s246_s6] sm:$0xff] %v244_v15  ;;  %v250_v18 = vsub.f32 %v244_v15, %v247_v16 }
  0x82   : > { %v251_v19 = vadd.f32 %v250_v18, %v249_v17 }
  0x84   : > { %252 = vst [vmem:[#allocation2] sm:$0xff] %v251_v19 }
  0x87   : > { %v257_v20 = vld [vmem:[#allocation10] sm:$0xff]  ;;  %v258_v21 = vld [vmem:[#allocation10 + $0x8] sm:$0xff]  ;;  %v259_v22 = vld [vmem:[#allocation10 + $0x10] sm:$0xff] }
  0x88   : > { %v265_v23 = vadd.f32 %v258_v21, %v257_v20  ;;  %v260_v24 = vld [vmem:[#allocation10 + $0x18] sm:$0xff]  ;;  %v261_v26 = vld [vmem:[#allocation10 + $0x20] sm:$0xff]  ;;  %v262_v28 = vld [vmem:[#allocation10 + $0x28] sm:$0xff] }
  0x89   : > { %v263_v30 = vld [vmem:[#allocation10 + $0x30] sm:$0xff]  ;;  %v264_v32 = vld [vmem:[#allocation10 + $0x38] sm:$0xff] }
  0x8a   : > { %v266_v25 = vadd.f32 %v265_v23, %v259_v22 }
  0x8c   : > { %v267_v27 = vadd.f32 %v266_v25, %v260_v24 }
  0x8e   : > { %v268_v29 = vadd.f32 %v267_v27, %v261_v26 }
  0x90   : > { %v269_v31 = vadd.f32 %v268_v29, %v262_v28 }
  0x92   : > { %v270_v33 = vadd.f32 %v269_v31, %v263_v30 }
  0x94   : > { %v271_v34 = vadd.f32 %v270_v33, %v264_v32 }
  0x96   : > { %272 = vst [vmem:[#allocation2] sm:$0xff] %v271_v34 }
  0x97 PF: > { %s667_s13 = smov [#allocation10]   ;;  %p933_p0 = scmp.eq.s32.totalorder %s720_s23, 19 }
  0x98   : > { %s287_s15 = sshll.u32 %s667_s13, 4  ;;  %s288_s15 = int_to_ptr.vmem [resolvable:$true] %s287_s15 }
  0x99   : > { %s558_s16 = scalar_lea.vmem %s288_s15, 1024  ;;  %p565_p12 = scmp.lt.s32.totalorder %s288_s15, %s288_s15 }
  0x9a   : > { %p559_p11 = scmp.ne.s32.totalorder %s288_s15, %s558_s16  ;;  %p566_p1 = scmp.lt.s32.totalorder %s558_s16, %s558_s16 }
  0x9c   : > { %p560_p4 = pnand %p559_p11, %p933_p0  ;;  %p567_p13 = por %p566_p1, %p565_p12 }
  0x9d   : > { %v273_v35 = vld [vmem:[#allocation2] sm:$0xff] }
  0x9e   : > { %v274_v36 = vmul.f32 0.125, %v273_v35  ;;  %p561_p8 = pneg %p560_p4 }
  0xa0   : > { %275 = vst [vmem:[%s842_s27] sm:$0xff] %v274_v36  ;;  %p568_p10 = pnand %p567_p13, %p561_p8 }
  0xa2   : > { %571 = shalt.err (!%p568_p10)
}
  0xa3   : > { %s572_s19 = scalar_lea.hbm %s916_s3, 1024  ;;  %p934_p7 = pmov %p933_p0 }
  0xa4   : > { %p573_p5 = scmp.ne.s32.totalorder %s916_s3, %s572_s19  ;;  %p578_p9 = scmp.lt.u32.totalorder %s572_s19, %s916_s3 }
  0xa6   : > { %p574_p2 = pnand %p573_p5, %p934_p7 }
  0xa8   : > { %p575_p6 = pneg %p574_p2 }
  0xaa   : > { %p580_p11 = pnand %p578_p9, %p575_p6 }
  0xac   : > { %583 = shalt.err (!%p580_p11)
}
  0xad   : > { %s668_s29 = smov 128   ;;  %s669_s7 = smov 8  }
  0xae   : > { %426 = dma.vmem_to_hbm [thread:$0]  (%p933_p0), %s288_s15, 1024, %s916_s3, [#allocation7], %s668_s29, %s668_s29, %s669_s7  }
  0xaf   : > { %s415_s12 = sshll.u32 %s720_s23, 7  ;;  %s303_s17 = sshll.u32 %s842_s27, 4  ;;  %s304_s17 = int_to_ptr.vmem [resolvable:$true] %s303_s17 }
  0xb0   : > { %s871_s16 = scalar_lea.hbm %s917_s4, %s415_s12  ;;  %s277_s18 = scalar_lea.sflag [#allocation12], %s832_s11 }
  0xb1   : > { %s584_s19 = scalar_lea.vmem %s304_s17, 128  ;;  %s670_s8 = smov [#allocation11]  }
  0xb2   : > { %p585_p4 = scmp.ne.s32.totalorder %s304_s17, %s584_s19  ;;  %s588_s9 = sshll.u32 %s670_s8, 4  ;;  %s589_s9 = int_to_ptr.vmem [resolvable:$false] %s588_s9 }
  0xb3   : > { %s590_s10 = scalar_lea.vmem %s589_s9, 256  ;;  %p591_p1 = scmp.lt.s32.totalorder %s304_s17, %s589_s9 }
  0xb4   : > { %p586_p8 = pnand %p585_p4, %p783_p3  ;;  %p592_p13 = scmp.lt.s32.totalorder %s590_s10, %s584_s19 }
  0xb6   : > { %p587_p12 = pneg %p586_p8  ;;  %p593_p10 = por %p592_p13, %p591_p1 }
  0xb8   : > { %p594_p5 = pnand %p593_p10, %p587_p12 }
  0xba   : > { %597 = shalt.err (!%p594_p5)
}
  0xbb   : > { %s598_s11 = scalar_lea.hbm %s871_s16, 128  ;;  %s602_s30 = scalar_lea.hbm %s917_s4, 2560 }
  0xbc   : > { %p599_p7 = scmp.ne.s32.totalorder %s871_s16, %s598_s11  ;;  %p603_p9 = scmp.lt.u32.totalorder %s871_s16, %s917_s4 }
  0xbd   : > { %p604_p11 = scmp.lt.u32.totalorder %s602_s30, %s598_s11  ;;  %p606_p4 = scmp.lt.u32.totalorder %s598_s11, %s871_s16 }
  0xbe   : > { %p600_p2 = pnand %p599_p7, %p783_p3 }
  0xbf   : > { %p605_p0 = por %p604_p11, %p603_p9 }
  0xc0   : > { %p601_p6 = pneg %p600_p2 }
  0xc1   : > { %p607_p8 = por %p606_p4, %p605_p0 }
  0xc3   : > { %p608_p12 = pnand %p607_p8, %p601_p6 }
  0xc5   : > { %611 = shalt.err (!%p608_p12)
}
  0xc6   : > { %427 = dma.vmem_to_hbm [thread:$0]  (%p783_p3), %s304_s17, 128, %s871_s16, %s277_s18  }
  0xc7   : > { %p935_p1 = scmp.eq.s32.totalorder %s720_s23, 19 }
  0xc9   : > { %639 = dma.done.wait (%p935_p1), [#allocation7], 1024   ;;  %p936_p13 = pmov %p935_p1 }
  0xcb   : > { %641 = vsyncadd (%p936_p13), [#allocation7], 4294966272 }
  0xcc PF: > { %p448_p10 = scmp.ge.s32.totalorder %s660_s22, 2  ;;  %s319_s14 = sand.u32 1, %s648_s0  }
  0xcd   : > { %p937_p5 = scmp.ne.s32.totalorder %s922_s26, 0  ;;  %s320_s25 = scalar_lea.sflag [#allocation12], %s319_s14 }
  0xcf   : > { %p440_p7 = pnand %p448_p10, %p937_p5 }
  0xd1   : > { %643 = dma.done.wait (!%p440_p7), %s320_s25, 128  }
  0xd2   : > { %645 = vsyncadd (!%p440_p7), %s320_s25, 4294967168  ;;  %p26_p3 = scmp.ge.s32.totalorder %s753_s5, 22   ;;  %s938_s0 = smov %s652_s20 }
  0xd3   : > { %s939_s20 = smov %s656_s21  ;;  %s940_s21 = smov %s779_s24 }
  0xd4   : > { %s941_s22 = smov %s753_s5  ;;  %28 = sbr.rel (!%p26_p3) target bundleno = 22 (0x16), region = 96 }
  0xdb   :  { %325 = vsyncpa [#allocation6], 1 }
  0xdc   :  { %327 = vsyncpa [#allocation6 + $0x1], 1 }
  0xdd   :  { %328 = vsyncpa [#allocation9], 1 }
  0xde   :  { %330 = vsyncpa [#allocation9 + $0x1], 1 }
  0xdf   :  { %331 = vsyncpa [#allocation7], 1 }
  0xe0   :  { %333 = vsyncpa [#allocation7 + $0x1], 1 }
  0xe1   :  { %334 = vsyncpa [#allocation12], 1 }
  0xe2   :  { %336 = vsyncpa [#allocation12 + $0x1], 1 }

</bundles_post_ra>
